<compile_context>
chip_gen: v7x
topology: tpu7x:2x2x1
jax: 0.10.0
libtpu: 0.0.40
codegen_flags: <defaults>
</compile_context>

<pallas_src>
import functools

import jax
import jax.numpy as jnp
from jax.experimental import pallas as pl
from jax.experimental.pallas import tpu as pltpu


def _contrastive_cs_kernel(c1_ref, c2_ref, s1_ref, s2_ref, psum_ref,
                           *, margin, eps, batch, tile_b, needs_mask):
    # (tile_b, D) blocks; cast to f32 in-kernel so accumulation is exact even
    # for bf16 inputs while HBM reads stay at the native width.
    dc = c1_ref[...].astype(jnp.float32) - c2_ref[...].astype(jnp.float32)
    ds = s1_ref[...].astype(jnp.float32) - s2_ref[...].astype(jnp.float32)

    if needs_mask:
        # Last block may run past the true batch size; zero padded rows so
        # they contribute nothing (also kills any garbage/NaN padding).
        row0 = pl.program_id(0) * tile_b
        rows = jax.lax.broadcasted_iota(jnp.int32, (tile_b, 1), 0) + row0
        valid = rows < batch                                 # (tile_b, 1)
        dc = jnp.where(valid, dc, 0.0)
        ds = jnp.where(valid, ds, 0.0)

    # c-branch: per-row squared L2 -> hinge -> square (per-row nonlinear, so
    # the cross-lane keepdims reduce is genuinely required).
    dist_c = jnp.sum(dc * dc, axis=-1, keepdims=True)        # (tile_b, 1)
    hinge = jnp.maximum(margin - jnp.sqrt(dist_c + eps), 0.0)
    losses_c = hinge * hinge
    if needs_mask:
        # Load-bearing: padded rows have dist_c == 0 -> hinge ~= margin.
        losses_c = jnp.where(valid, losses_c, 0.0)

    # s-branch: only the global sum is needed -> single full reduce.
    psum_ref[0, 0] = jnp.sum(losses_c)
    psum_ref[0, 1] = jnp.sum(ds * ds)


def _round_up(x, m):
    return (x + m - 1) // m * m


def _vmem_budget_bytes():
    """~45% of physical VMEM: ~57 MiB on v5e/v6e (128 MiB), ~29 MiB on v7x."""
    cap = None
    try:
        cap = getattr(pltpu.get_tpu_info(), "vmem_capacity_bytes", None)
    except Exception:
        cap = None
    if not cap:
        cap = 64 * 1024 * 1024          # conservative fallback (v7x physical)
    return int(0.45 * int(cap))


def contrastive_loss_cs(output_c1, output_c2, output_s1, output_s2,
                        margin, eps=1e-9):
    """Pallas TPU forward of ContrastiveLoss_CS.

    Returns (losses_c.mean(), losses_s.mean()) as float32 scalars.
    """
    B, D = output_c1.shape
    itemsize = jnp.dtype(output_c1.dtype).itemsize
    sublane = max(8, 32 // itemsize)          # f32: 8, bf16: 16, int8/fp8: 32

    # Generation-aware VMEM budget; leave ~2 MiB headroom for the tiny SMEM
    # output buffers and Mosaic internal scratch on top of the 8 input
    # double-buffers, and pass the full budget as the explicit VMEM limit.
    vmem_limit = _vmem_budget_bytes()
    data_budget = max(1 << 20, vmem_limit - 2 * 1024 * 1024)
    bytes_per_row = 4 * 2 * D * itemsize      # 4 inputs x 2 pipeline buffers
    max_tile = max(sublane, (data_budget // bytes_per_row) // sublane * sublane)

    tile_b = min(max_tile, _round_up(B, sublane))
    # Keep >=2 grid steps whenever the batch allows it so both v7x
    # TensorCores get work (no effect on single-TC v5e/v6e beyond one extra
    # cheap grid step).
    tile_b = min(tile_b, max(sublane, _round_up(int(pl.cdiv(B, 2)), sublane)))
    tile_b = int(tile_b)

    num_blocks = int(pl.cdiv(B, tile_b))
    needs_mask = (num_blocks * tile_b) != B

    kernel = functools.partial(
        _contrastive_cs_kernel,
        margin=float(margin), eps=float(eps),
        batch=B, tile_b=tile_b, needs_mask=needs_mask)

    in_spec = pl.BlockSpec((tile_b, D), lambda i: (i, 0))
    # Fused per-block partials [losses_c_sum, dist_s_sum] -> one SMEM output
    # descriptor per step.
    out_spec = pl.BlockSpec((1, 2), lambda i: (i, 0),
                            memory_space=pltpu.MemorySpace.SMEM)

    cost = pl.CostEstimate(
        flops=6 * B * D + 6 * B,
        transcendentals=B,                     # one sqrt per row
        bytes_accessed=4 * B * D * itemsize + num_blocks * 2 * 4)

    psum = pl.pallas_call(
        kernel,
        grid=(num_blocks,),
        in_specs=[in_spec, in_spec, in_spec, in_spec],
        out_specs=out_spec,
        out_shape=jax.ShapeDtypeStruct((num_blocks, 2), jnp.float32),
        compiler_params=pltpu.CompilerParams(
            dimension_semantics=("parallel",),
            vmem_limit_bytes=int(vmem_limit)),
        cost_estimate=cost,
    )(output_c1, output_c2, output_s1, output_s2)

    inv_b = jnp.float32(1.0 / B)
    sums = jnp.sum(psum, axis=0)               # tiny (num_blocks, 2) reduce
    return sums[0] * inv_b, sums[1] * inv_b


def _reference(c1, c2, s1, s2, margin, eps=1e-9):
    # Mirrors the PyTorch module exactly (eps added *before* the sqrt).
    c1, c2 = c1.astype(jnp.float32), c2.astype(jnp.float32)
    s1, s2 = s1.astype(jnp.float32), s2.astype(jnp.float32)
    dist_c = jnp.sum((c1 - c2) ** 2, axis=-1)
    dist_s = jnp.sum((s1 - s2) ** 2, axis=-1)
    losses_c = jnp.maximum(margin - jnp.sqrt(dist_c + eps), 0.0) ** 2
    return jnp.mean(losses_c), jnp.mean(dist_s)


if __name__ == "__main__":
    key = jax.random.PRNGKey(0)
    margin = 1.0

    # Case 1: f32, batch divides the sublane tile exactly (no masking path).
    k1, k2, k3, k4 = jax.random.split(key, 4)
    batch, hidden = 8, 32
    c1 = jax.random.normal(k1, (batch, hidden), dtype=jnp.float32)
    c2 = jax.random.normal(k2, (batch, hidden), dtype=jnp.float32)
    s1 = jax.random.normal(k3, (batch, hidden), dtype=jnp.float32)
    s2 = jax.random.normal(k4, (batch, hidden), dtype=jnp.float32)

    loss_c, loss_s = contrastive_loss_cs(c1, c2, s1, s2, margin)
    jax.block_until_ready((loss_c, loss_s))
    ref_c, ref_s = _reference(c1, c2, s1, s2, margin)
    assert jnp.allclose(loss_c, ref_c, rtol=1e-5, atol=1e-5), (loss_c, ref_c)
    assert jnp.allclose(loss_s, ref_s, rtol=1e-5, atol=1e-5), (loss_s, ref_s)

    # Case 2: bf16 inputs with a ragged batch (exercises in-kernel cast,
    # bf16 sublane rounding, and last-block masking).
    k5, k6, k7, k8 = jax.random.split(jax.random.PRNGKey(1), 4)
    batch2, hidden2 = 13, 32
    c1b = jax.random.normal(k5, (batch2, hidden2), dtype=jnp.bfloat16)
    c2b = jax.random.normal(k6, (batch2, hidden2), dtype=jnp.bfloat16)
    s1b = jax.random.normal(k7, (batch2, hidden2), dtype=jnp.bfloat16)
    s2b = jax.random.normal(k8, (batch2, hidden2), dtype=jnp.bfloat16)

    loss_c2, loss_s2 = contrastive_loss_cs(c1b, c2b, s1b, s2b, margin)
    jax.block_until_ready((loss_c2, loss_s2))
    ref_c2, ref_s2 = _reference(c1b, c2b, s1b, s2b, margin)
    assert jnp.allclose(loss_c2, ref_c2, rtol=1e-5, atol=1e-5), (loss_c2, ref_c2)
    assert jnp.allclose(loss_s2, ref_s2, rtol=1e-5, atol=1e-5), (loss_s2, ref_s2)

    # Case 3: f32 batch large enough to split into >=2 "parallel" grid steps.
    k9, k10, k11, k12 = jax.random.split(jax.random.PRNGKey(2), 4)
    batch3, hidden3 = 48, 32
    c1c = jax.random.normal(k9, (batch3, hidden3), dtype=jnp.float32)
    c2c = jax.random.normal(k10, (batch3, hidden3), dtype=jnp.float32)
    s1c = jax.random.normal(k11, (batch3, hidden3), dtype=jnp.float32)
    s2c = jax.random.normal(k12, (batch3, hidden3), dtype=jnp.float32)

    loss_c3, loss_s3 = contrastive_loss_cs(c1c, c2c, s1c, s2c, margin)
    jax.block_until_ready((loss_c3, loss_s3))
    ref_c3, ref_s3 = _reference(c1c, c2c, s1c, s2c, margin)
    assert jnp.allclose(loss_c3, ref_c3, rtol=1e-5, atol=1e-5), (loss_c3, ref_c3)
    assert jnp.allclose(loss_s3, ref_s3, rtol=1e-5, atol=1e-5), (loss_s3, ref_s3)

    print("KERNEL_OK")
</pallas_src>

<mosaic_0001>
module attributes {stable_mosaic.version = 11 : i64} {
  func.func @_contrastive_cs_kernel(%arg0: i32, %arg1: memref<8x32xf32, #tpu.memory_space<vmem>>, %arg2: memref<8x32xf32, #tpu.memory_space<vmem>>, %arg3: memref<8x32xf32, #tpu.memory_space<vmem>>, %arg4: memref<8x32xf32, #tpu.memory_space<vmem>>, %arg5: memref<1x2xf32, #tpu.memory_space<smem>>) attributes {dimension_semantics = [#tpu.dimension_semantics<parallel>], iteration_bounds = array<i64: 1>, scalar_prefetch = 0 : i64, scratch_operands = 0 : i64, tpu.core_type = #tpu.core_type<tc>, window_params = [{transform_indices = @transform_0, window_bounds = array<i64: 8, 32>}, {transform_indices = @transform_1, window_bounds = array<i64: 8, 32>}, {transform_indices = @transform_2, window_bounds = array<i64: 8, 32>}, {transform_indices = @transform_3, window_bounds = array<i64: 8, 32>}, {transform_indices = @transform_4, window_bounds = array<i64: 1, 2>}]} {
    %c0 = arith.constant 0 : index
    %c0_0 = arith.constant 0 : index
    %0 = vector.load %arg1[%c0, %c0_0] : memref<8x32xf32, #tpu.memory_space<vmem>>, vector<8x32xf32>
    %c0_1 = arith.constant 0 : index
    %c0_2 = arith.constant 0 : index
    %1 = vector.load %arg2[%c0_1, %c0_2] : memref<8x32xf32, #tpu.memory_space<vmem>>, vector<8x32xf32>
    %2 = arith.subf %0, %1 : vector<8x32xf32>
    %c0_3 = arith.constant 0 : index
    %c0_4 = arith.constant 0 : index
    %3 = vector.load %arg3[%c0_3, %c0_4] : memref<8x32xf32, #tpu.memory_space<vmem>>, vector<8x32xf32>
    %c0_5 = arith.constant 0 : index
    %c0_6 = arith.constant 0 : index
    %4 = vector.load %arg4[%c0_5, %c0_6] : memref<8x32xf32, #tpu.memory_space<vmem>>, vector<8x32xf32>
    %5 = arith.subf %3, %4 : vector<8x32xf32>
    %6 = arith.mulf %2, %2 : vector<8x32xf32>
    %cst = arith.constant dense<0.000000e+00> : vector<8xf32>
    %7 = vector.multi_reduction <add>, %6, %cst [1] : vector<8x32xf32> to vector<8xf32>
    %8 = vector.shape_cast %7 : vector<8xf32> to vector<8x1xf32>
    %cst_7 = arith.constant 9.99999971E-10 : f32
    %9 = vector.broadcast %cst_7 : f32 to vector<8x1xf32>
    %10 = arith.addf %8, %9 : vector<8x1xf32>
    %11 = math.sqrt %10 : vector<8x1xf32>
    %cst_8 = arith.constant 1.000000e+00 : f32
    %12 = vector.broadcast %cst_8 : f32 to vector<8x1xf32>
    %13 = arith.subf %12, %11 : vector<8x1xf32>
    %cst_9 = arith.constant 0.000000e+00 : f32
    %14 = vector.broadcast %cst_9 : f32 to vector<8x1xf32>
    %15 = arith.maximumf %13, %14 : vector<8x1xf32>
    %16 = arith.mulf %15, %15 : vector<8x1xf32>
    %17 = vector.shape_cast %16 : vector<8x1xf32> to vector<1x8x1xf32>
    %cst_10 = arith.constant dense<0.000000e+00> : vector<1xf32>
    %18 = vector.multi_reduction <add>, %17, %cst_10 [1, 2] : vector<1x8x1xf32> to vector<1xf32>
    %19 = vector.shape_cast %18 : vector<1xf32> to vector<1x1x1xf32>
    %20 = vector.extract %19[0, 0, 0] : f32 from vector<1x1x1xf32>
    %c0_11 = arith.constant 0 : index
    %c0_12 = arith.constant 0 : index
    %21 = memref.load %arg5[%c0_11, %c0_12] : memref<1x2xf32, #tpu.memory_space<smem>>
    memref.store %20, %arg5[%c0_11, %c0_12] : memref<1x2xf32, #tpu.memory_space<smem>>
    %22 = arith.mulf %5, %5 : vector<8x32xf32>
    %23 = vector.shape_cast %22 : vector<8x32xf32> to vector<1x8x32xf32>
    %cst_13 = arith.constant dense<0.000000e+00> : vector<1xf32>
    %24 = vector.multi_reduction <add>, %23, %cst_13 [1, 2] : vector<1x8x32xf32> to vector<1xf32>
    %25 = vector.shape_cast %24 : vector<1xf32> to vector<1x1x1xf32>
    %26 = vector.extract %25[0, 0, 0] : f32 from vector<1x1x1xf32>
    %c0_14 = arith.constant 0 : index
    %c1 = arith.constant 1 : index
    %27 = memref.load %arg5[%c0_14, %c1] : memref<1x2xf32, #tpu.memory_space<smem>>
    memref.store %26, %arg5[%c0_14, %c1] : memref<1x2xf32, #tpu.memory_space<smem>>
    return
  }
  func.func @transform_0(%arg0: i32) -> (i32, i32) {
    %c0_i32 = arith.constant 0 : i32
    %c0_i32_0 = arith.constant 0 : i32
    return %arg0, %c0_i32 : i32, i32
  }
  func.func @transform_1(%arg0: i32) -> (i32, i32) {
    %c0_i32 = arith.constant 0 : i32
    %c0_i32_0 = arith.constant 0 : i32
    return %arg0, %c0_i32 : i32, i32
  }
  func.func @transform_2(%arg0: i32) -> (i32, i32) {
    %c0_i32 = arith.constant 0 : i32
    %c0_i32_0 = arith.constant 0 : i32
    return %arg0, %c0_i32 : i32, i32
  }
  func.func @transform_3(%arg0: i32) -> (i32, i32) {
    %c0_i32 = arith.constant 0 : i32
    %c0_i32_0 = arith.constant 0 : i32
    return %arg0, %c0_i32 : i32, i32
  }
  func.func @transform_4(%arg0: i32) -> (i32, i32) {
    %c0_i32 = arith.constant 0 : i32
    %c0_i32_0 = arith.constant 0 : i32
    return %arg0, %c0_i32 : i32, i32
  }
}

</mosaic_0001>

<bundles_post_ra>
// kernel: tpu_custom_call.1
= control target key start
LH: loop header
LB: loop body
LE: loop exit
PB: predicated region body
PF: predicated region fallthrough
CT: control target
= control target key end

     0   :  { %9 = vsyncpa [#allocation3], 0  ;;  %s288_s0 = inlined_call_operand.hbm [shape: f32[8,32], index: 0, kind: input, shape index: {}]   ;;  %s289_s1 = inlined_call_operand.hbm [shape: f32[8,32], index: 1, kind: input, shape index: {}]   ;;  %s290_s2 = inlined_call_operand.hbm [shape: f32[8,32], index: 2, kind: input, shape index: {}]   ;;  %s291_s3 = inlined_call_operand.vmem [shape: f32[8,32], index: 3, kind: input, shape index: {}]   ;;  %s292_s4 = inlined_call_operand.hbm [shape: f32[1,2], index: 4, kind: output, shape index: {}]  }
   0x1   :  { %10 = vsyncpa [#allocation6], 0 }
   0x2   :  { %11 = vsyncpa [#allocation4], 0  ;;  %s208_s15 = smov [#allocation5]   ;;  %s209_s17 = smov [#allocation2]  }
   0x3   :  { %s28_s16 = sshll.u32 %s208_s15, 4  ;;  %s18_s18 = sshll.u32 %s209_s17, 4  ;;  %s29_s16 = int_to_ptr.vmem [resolvable:$true] %s28_s16  ;;  %s19_s18 = int_to_ptr.vmem [resolvable:$true] %s18_s18 }
   0x4   :  { %s126_s21 = scalar_lea.hbm %s289_s1, 128 }
   0x5   :  { %p127_p0 = scmp.ne.s32.totalorder %s289_s1, %s126_s21  ;;  %p130_p1 = scmp.lt.u32.totalorder %s126_s21, %s289_s1 }
   0x7   :  { %p132_p2 = pnand %p130_p1, %p127_p0 }
   0x9   :  { %135 = shalt.err (!%p132_p2)
}
   0xa   :  { %s136_s26 = scalar_lea.vmem %s29_s16, 128  ;;  %p141_p4 = scmp.lt.s32.totalorder %s29_s16, %s29_s16 }
   0xb   :  { %p137_p3 = scmp.ne.s32.totalorder %s29_s16, %s136_s26  ;;  %p142_p5 = scmp.lt.s32.totalorder %s136_s26, %s136_s26 }
   0xd   :  { %p143_p6 = por %p142_p5, %p141_p4 }
   0xf   :  { %p144_p7 = pnand %p143_p6, %p137_p3 }
  0x11   :  { %147 = shalt.err (!%p144_p7)
}
  0x12   :  { %31 = dma.hbm_to_vmem [thread:$0]  %s289_s1, 128, %s29_s16, [#allocation6]  }
  0x13   :  { %s148_s5 = scalar_lea.hbm %s288_s0, 128 }
  0x14   :  { %p149_p8 = scmp.ne.s32.totalorder %s288_s0, %s148_s5  ;;  %p152_p9 = scmp.lt.u32.totalorder %s148_s5, %s288_s0 }
  0x16   :  { %p154_p10 = pnand %p152_p9, %p149_p8 }
  0x18   :  { %157 = shalt.err (!%p154_p10)
}
  0x19   :  { %s158_s10 = scalar_lea.vmem %s19_s18, 128  ;;  %p163_p12 = scmp.lt.s32.totalorder %s19_s18, %s19_s18 }
  0x1a   :  { %p159_p11 = scmp.ne.s32.totalorder %s19_s18, %s158_s10  ;;  %p164_p13 = scmp.lt.s32.totalorder %s158_s10, %s158_s10 }
  0x1c   :  { %p165_p0 = por %p164_p13, %p163_p12 }
  0x1e   :  { %p166_p1 = pnand %p165_p0, %p159_p11 }
  0x20   :  { %169 = shalt.err (!%p166_p1)
}
  0x21   :  { %21 = dma.hbm_to_vmem [thread:$0]  %s288_s0, 128, %s19_s18, [#allocation3]  }
  0x22   :  { %s210_s12 = smov [#allocation7]   ;;  %s170_s16 = scalar_lea.hbm %s290_s2, 128 }
  0x23   :  { %s38_s13 = sshll.u32 %s210_s12, 4  ;;  %p171_p2 = scmp.ne.s32.totalorder %s290_s2, %s170_s16  ;;  %s39_s13 = int_to_ptr.vmem [resolvable:$true] %s38_s13 }
  0x24   :  { %p174_p3 = scmp.lt.u32.totalorder %s170_s16, %s290_s2 }
  0x26   :  { %p176_p4 = pnand %p174_p3, %p171_p2 }
  0x28   :  { %179 = shalt.err (!%p176_p4)
}
  0x29   :  { %s180_s22 = scalar_lea.vmem %s39_s13, 128  ;;  %p185_p6 = scmp.lt.s32.totalorder %s39_s13, %s39_s13 }
  0x2a   :  { %p181_p5 = scmp.ne.s32.totalorder %s39_s13, %s180_s22  ;;  %p186_p7 = scmp.lt.s32.totalorder %s180_s22, %s180_s22 }
  0x2c   :  { %p187_p8 = por %p186_p7, %p185_p6 }
  0x2e   :  { %p188_p9 = pnand %p187_p8, %p181_p5 }
  0x30   :  { %191 = shalt.err (!%p188_p9)
}
  0x31   :  { %41 = dma.hbm_to_vmem [thread:$0]  %s290_s2, 128, %s39_s13, [#allocation6]  }
  0x32   :  { %202 = dma.done.wait [#allocation3], 128  }
  0x33   :  { %203 = vsyncadd [#allocation3], 4294967168 }
  0x34   :  { %204 = dma.done.wait [#allocation6], 256  }
  0x35   :  { %205 = vsyncadd [#allocation6], 4294967040  ;;  %v53_v0 = vld [vmem:[#allocation2] sm:$0xff]  ;;  %v54_v1 = vld [vmem:[#allocation5] sm:$0xff]  ;;  %vm60_vm0 = vcmask 261120   ;;  %vm75_vm3 = vcmask 7168  }
  0x36   :  { %v55_v2 = vsub.f32 %v53_v0, %v54_v1  ;;  %v56_v5 = vld [vmem:[#allocation7] sm:$0xff]  ;;  %v57_v6 = vld [vmem:[%s291_s3] sm:$0xff]  ;;  %s192_s27 = scalar_lea.hbm %s292_s4, 16 }
  0x37   :  { %v58_v7 = vsub.f32 %v56_v5, %v57_v6  ;;  %p193_p10 = scmp.ne.s32.totalorder %s292_s4, %s192_s27  ;;  %p196_p11 = scmp.lt.u32.totalorder %s192_s27, %s292_s4 }
  0x38   :  { %v59_v3 = vmul.f32 %v55_v2, %v55_v2 }
  0x39   :  { %v88_v8 = vmul.f32 %v58_v7, %v58_v7  ;;  %p198_p12 = pnand %p196_p11, %p193_p10 }
  0x3a   :  { %v61_v4 = vsel %vm60_vm0, %v59_v3, 0.0 }
  0x3b   :  { %62 = vadd.xlane.f32.xlu0 %v61_v4  ;;  %v89_v9 = vsel %vm60_vm0, %v88_v8, 0.0 }
  0x3c   :  { %90 = vadd.xlane.f32.xlu1 %v89_v9 }
  0xc8   :  { %v63_v10 = vpop.xlane.xlu0 %62 }
  0xc9   :  { %v64_v11 = vadd.f32 1e-09, %v63_v10  ;;  %v91_v21 = vpop.xlane.xlu1 %90 }
  0xca   :  { %v92_v22 = vrot.slane %v91_v21, 4 }
  0xcb   :  { %124 = vrsqrt.f32 %v64_v11  ;;  %vm67_vm1 = vcmp.eq.f32.partialorder %v64_v11, inf  ;;  %v70_v14 = vand.u32 2147483648, %v64_v11  ;;  %vm69_vm2 = vcmp.eq.f32.partialorder %v64_v11, 0.0 }
  0xcc   :  { %v93_v23 = vadd.f32 %v92_v22, %v91_v21 }
  0xce   :  { %v94_v24 = vrot.slane %v93_v23, 2 }
  0xd0   :  { %v95_v28 = vadd.f32 %v94_v24, %v93_v23 }
  0xd2   :  { %v96_v31 = vrot.slane %v95_v28, 1 }
  0xd4   :  { %v97_v34 = vadd.f32 %v96_v31, %v95_v28 }
  0xd5   :  { %v125_v12 = vpop.eup %124 }
  0xd6   :  { %v66_v13 = vmul.f32 %v125_v12, %v64_v11 }
  0xd8   :  { %v68_v15 = vsel %vm67_vm1, %v64_v11, %v66_v13 }
  0xd9   :  { %v71_v16 = vsel %vm69_vm2, %v70_v14, %v68_v15 }
  0xda   :  { %v72_v17 = vsub.f32 1.0, %v71_v16 }
  0xdc   :  { %v73_v18 = vmax.f32 %v72_v17, 0.0 }
  0xde   :  { %v74_v19 = vmul.f32 %v73_v18, %v73_v18 }
  0xe0   :  { %v76_v20 = vsel %vm75_vm3, %v74_v19, 0.0 }
  0xe1   :  { %77 = vadd.xlane.f32.xlu0 %v76_v20 }
 0x16e   :  { %v78_v25 = vpop.xlane.xlu0 %77 }
 0x16f   :  { %v79_v26 = vrot.slane %v78_v25, 4 }
 0x171   :  { %v80_v27 = vadd.f32 %v79_v26, %v78_v25 }
 0x173   :  { %v81_v29 = vrot.slane %v80_v27, 2 }
 0x175   :  { %v82_v30 = vadd.f32 %v81_v29, %v80_v27 }
 0x177   :  { %v83_v32 = vrot.slane %v82_v30, 1 }
 0x179   :  { %v84_v33 = vadd.f32 %v83_v32, %v82_v30 }
 0x17b   :  { %116 = vpush %v84_v33 }
 0x17c   :  { %118 = vpush %v97_v34 }
 0x1ac   :  { %s117_s2 = spop %116 }
 0x1ad   :  { %87 = sst [smem:[#allocation8]] %s117_s2  ;;  %s119_s3 = spop %118 }
 0x1ae   :  { %100 = sst [smem:[#allocation8 + $0x1]] %s119_s3 }
 0x1af   :  { %201 = shalt.err (!%p198_p12)
}
 0x1b0   :  { %s211_s6 = smov [#allocation8]  }
 0x1b1   :  { %108 = dma.smem_to_hbm %s211_s6, 16, %s292_s4, [#allocation4]  }
 0x1b2   :  { %206 = dma.done.wait [#allocation4], 16  }
 0x1b3   :  { %207 = vsyncadd [#allocation4], 4294967280 }
 0x1b4   :  { %112 = sfence }
 0x1b5   :  { %113 = vsyncpa [#allocation3], 1 }
 0x1b6   :  { %114 = vsyncpa [#allocation6], 1 }
 0x1b7   :  { %115 = vsyncpa [#allocation4], 1 }

</bundles_post_ra>
